<compile_context>
chip_gen: v7x
topology: tpu7x:2x2x1
jax: 0.10.0
libtpu: 0.0.40
codegen_flags: <defaults>
</compile_context>

<pallas_src>
import math

import jax
import jax.numpy as jnp
import numpy as np
from jax.experimental import pallas as pl
from jax.experimental.pallas import tpu as pltpu

PAD_VAL = -999.0


def enn_message_kernel(src_ref, dst_ref, edges_ref, x_ref, w_ref,
                       out_ref, acc_ref):
    """One batch element x one tile of directed edges."""
    p_blk = pl.program_id(1)

    @pl.when(p_blk == 0)
    def _():
        acc_ref[...] = jnp.zeros_like(acc_ref)

    src = src_ref[0]            # (tP, 1) i32 -- gather-source node, along sublanes
    dst = dst_ref[0]            # (1, tP) i32 -- scatter-dest node, along lanes
    edges = edges_ref[0]        # (tP, d_edge) f32 (PAD rows == PAD_VAL)
    x = x_ref[0]                # (N, D) f32 (resident across edge tiles)
    w = w_ref[...]              # ((d_edge+1)*D, K) f32 = [Bmat; W3[0]; ...; W3[d-1]]

    tP, d_edge = edges.shape
    N, D = x.shape
    K = w.shape[1]              # kernel_sz == d_model

    # ---- gather via one-hot matmul: x_in[p] = x[src[p]]  (single iota compare,
    # no concatenation of halves -- directions were pre-stacked host-side).
    col_iota = jax.lax.broadcasted_iota(jnp.int32, (tP, N), 1)
    oh_g = (col_iota == src).astype(jnp.float32)                           # (tP, N)
    x_in = jnp.dot(oh_g, x, preferred_element_type=jnp.float32)            # (tP, D)

    # ---- fused edge-network contraction (ONE MXU call, deep K):
    # ax = (x_in @ Bmat + sum_e edges[p,e] * (x_in @ W3[e])) / sqrt(K)
    #    = [x_in | e0*x_in | ... ] @ [Bmat; W3[0]; ...] / sqrt(K)
    x_big = jnp.concatenate(
        [x_in] + [edges[:, e:e + 1] * x_in for e in range(d_edge)], axis=1)  # (tP, (d_edge+1)*D)
    ax = jnp.dot(x_big, w, preferred_element_type=jnp.float32) * (1.0 / math.sqrt(K))

    # PAD edges (edges[:, 0] == PAD_VAL) contribute nothing: zero their rows.
    ax = jnp.where(edges[:, 0:1] == PAD_VAL, 0.0, ax)                      # (tP, K)

    # ---- scatter_add via one-hot built directly in (N, tP) orientation
    # (dst indices arrive along lanes -> no in-kernel transpose).
    row_iota = jax.lax.broadcasted_iota(jnp.int32, (N, tP), 0)
    oh_s = (row_iota == dst).astype(jnp.float32)                           # (N, tP)
    acc_ref[...] += jnp.dot(oh_s, ax, preferred_element_type=jnp.float32)  # (N, K)

    # Single cast + store of the f32 accumulator at the last edge tile.
    @pl.when(p_blk == pl.num_programs(1) - 1)
    def _():
        out_ref[0] = acc_ref[...].astype(out_ref.dtype)


def enn_message_forward(x, edges, pairs_idx, w_enn, b_enn, *, p_tile=None):
    """Pallas wrapper for ENNMessage.forward(x, edges, pairs_idx, t=0)."""
    B, N, D = x.shape
    _, E, d_edge = edges.shape
    K = D  # kernel_sz == d_model

    # ---- host-side pre-stacking of the bidirectional (directed) edge list:
    # no in-kernel concatenation of one-hot halves or of edge features.
    # direction 0: gather x[pairs[:,1]] -> scatter to pairs[:,0]
    # direction 1: gather x[pairs[:,0]] -> scatter to pairs[:,1]
    src_idx = jnp.concatenate([pairs_idx[:, :, 1], pairs_idx[:, :, 0]],
                              axis=1)[..., None]                    # (B, 2E, 1)
    dst_idx = jnp.concatenate([pairs_idx[:, :, 0], pairs_idx[:, :, 1]],
                              axis=1)[:, None, :]                   # (B, 1, 2E)
    edges2 = jnp.concatenate([edges, edges], axis=1)                # (B, 2E, d_edge)

    P = 2 * E
    # One tile covers the demo.  For large E pick the largest multiple of 128
    # such that double-buffered (src/dst/edges blocks) + the (tP,N)/(N,tP)
    # one-hots + the (tP,(d_edge+1)*D) stacked operand + resident x / weights
    # fit the scoped VMEM budget -- roughly 2x smaller on v7x (64 MiB) than on
    # v5e/v6e (128 MiB).
    if p_tile is None:
        p_tile = P
    assert P % p_tile == 0
    n_p_tiles = P // p_tile

    # Stacked edge-network weight: rows [Bmat; W3[0]; ...; W3[d_edge-1]].
    w3 = w_enn.reshape(d_edge, D, K)
    bmat = b_enn.reshape(D, K)
    w_deep = jnp.concatenate([bmat[None], w3], axis=0).reshape((d_edge + 1) * D, K)

    # NOTE(v7x): if B == 1, add a second "parallel" grid axis (e.g. tile N)
    # so both TensorCores are busy; with B >= 2 the batch axis suffices.
    return pl.pallas_call(
        enn_message_kernel,
        out_shape=jax.ShapeDtypeStruct((B, N, D), x.dtype),
        grid_spec=pltpu.PrefetchScalarGridSpec(
            num_scalar_prefetch=0,
            grid=(B, n_p_tiles),
            in_specs=[
                pl.BlockSpec((1, p_tile, 1), lambda b, p: (b, p, 0)),        # src idx (sublanes)
                pl.BlockSpec((1, 1, p_tile), lambda b, p: (b, 0, p)),        # dst idx (lanes)
                pl.BlockSpec((1, p_tile, d_edge), lambda b, p: (b, p, 0)),   # edge features
                pl.BlockSpec((1, N, D), lambda b, p: (b, 0, 0)),             # x (resident over p)
                pl.BlockSpec(((d_edge + 1) * D, K), lambda b, p: (0, 0)),    # stacked weights (resident)
            ],
            out_specs=pl.BlockSpec((1, N, K), lambda b, p: (b, 0, 0)),       # written once per b
            scratch_shapes=[pltpu.VMEM((N, K), jnp.float32)],                # f32 accumulator
        ),
        compiler_params=pltpu.CompilerParams(
            dimension_semantics=("parallel", "arbitrary"),
            vmem_limit_bytes=32 * 1024 * 1024,
        ),
    )(src_idx, dst_idx, edges2, x, w_deep)


def reference_forward(x, edges, pairs_idx, w_enn, b_enn):
    """Pure-JAX mirror of the PyTorch forward (kernel_sz == d_model, no ann)."""
    B, N, D = x.shape
    E = edges.shape[1]
    K = D
    a_vect = (edges @ w_enn + b_enn) / math.sqrt(K)
    mask = edges[:, :, 0:1] == PAD_VAL
    a_vect = jnp.where(mask, 0.0, a_vect)
    a_mat = a_vect.reshape(B, E, D, K)
    a_mat = jnp.concatenate([a_mat, a_mat], axis=1)                       # (B, 2E, D, K)
    pairs2 = jnp.concatenate([pairs_idx, pairs_idx[:, :, ::-1]], axis=1)  # (B, 2E, 2)
    bidx = jnp.arange(B)[:, None]
    x_in = x[bidx, pairs2[:, :, 1], :]                                    # (B, 2E, D)
    ax = jnp.einsum('bpd,bpdk->bpk', x_in, a_mat)                         # (B, 2E, K)
    m = jnp.zeros((B, N, D), x.dtype)
    m = m.at[bidx, pairs2[:, :, 0], :].add(ax)
    return m


if __name__ == "__main__":
    # Small shapes consistent with the module.
    B, N = 2, 8           # batch, num nodes
    d_model = 32          # d_model == kernel_sz (matmul branch)
    d_edge = 16
    E = 8                 # number of (unidirectional) edges / pairs

    key = jax.random.PRNGKey(0)
    kx, ke, kp, kw, kb = jax.random.split(key, 5)

    x = jax.random.normal(kx, (B, N, d_model), dtype=jnp.float32)
    edges = jax.random.normal(ke, (B, E, d_edge), dtype=jnp.float32)
    pairs_idx = jax.random.randint(kp, (B, E, 2), 0, N, dtype=jnp.int32)

    # Make the last edge of every graph a PAD edge (exercises the PAD mask);
    # padded edges point at node 0 so the gather stays valid, but their
    # message rows are zeroed so they contribute nothing.
    edges = edges.at[:, E - 1, :].set(PAD_VAL)
    pairs_idx = pairs_idx.at[:, E - 1, :].set(0)

    # Deterministic "FullyConnectedNet" (single linear) parameters.
    w_enn = 0.1 * jax.random.normal(kw, (d_edge, d_model * d_model), dtype=jnp.float32)
    b_enn = 0.1 * jax.random.normal(kb, (d_model * d_model,), dtype=jnp.float32)

    # TODO(synk): Encoder's attention sub-layers and final LayerNorm are not
    # defined in the provided spec; only the message-passing layer is kerneled.
    # TODO(synk): general kernel_sz < d_model (pad + unfold) branch and the
    # optional angle-attention (ann / scatter_mean) path are not implemented.

    out = enn_message_forward(x, edges, pairs_idx, w_enn, b_enn)
    out = jax.block_until_ready(out)

    ref = reference_forward(x, edges, pairs_idx, w_enn, b_enn)
    np.testing.assert_allclose(np.asarray(out), np.asarray(ref), rtol=1e-4, atol=1e-4)

    print("KERNEL_OK")
</pallas_src>

<mosaic_0001>
module attributes {stable_mosaic.version = 11 : i64} {
  func.func @enn_message_kernel(%arg0: i32, %arg1: i32, %arg2: memref<1x16x1xi32, #tpu.memory_space<vmem>>, %arg3: memref<1x1x16xi32, #tpu.memory_space<vmem>>, %arg4: memref<1x16x16xf32, #tpu.memory_space<vmem>>, %arg5: memref<1x8x32xf32, #tpu.memory_space<vmem>>, %arg6: memref<544x32xf32, #tpu.memory_space<vmem>>, %arg7: memref<1x8x32xf32, #tpu.memory_space<vmem>>, %arg8: memref<8x32xf32, #tpu.memory_space<vmem>>) attributes {dimension_semantics = [#tpu.dimension_semantics<parallel>, #tpu.dimension_semantics<arbitrary>], iteration_bounds = array<i64: 2, 1>, scalar_prefetch = 0 : i64, scratch_operands = 1 : i64, tpu.core_type = #tpu.core_type<tc>, window_params = [{transform_indices = @transform_0, window_bounds = array<i64: 1, 16, 1>}, {transform_indices = @transform_1, window_bounds = array<i64: 1, 1, 16>}, {transform_indices = @transform_2, window_bounds = array<i64: 1, 16, 16>}, {transform_indices = @transform_3, window_bounds = array<i64: 1, 8, 32>}, {pipeline_mode = #tpu.pipeline_mode<synchronous>, transform_indices = @transform_4, window_bounds = array<i64: 544, 32>}, {transform_indices = @transform_5, window_bounds = array<i64: 1, 8, 32>}]} {
    %c0_i32 = arith.constant 0 : i32
    %0 = arith.cmpi eq, %arg1, %c0_i32 : i32
    %1 = arith.extui %0 : i1 to i32
    %c0_i32_0 = arith.constant 0 : i32
    %2 = arith.cmpi ne, %1, %c0_i32_0 : i32
    scf.if %2 {
      %cst_25 = arith.constant 0.000000e+00 : f32
      %90 = vector.broadcast %cst_25 : f32 to vector<8x32xf32>
      %c0_26 = arith.constant 0 : index
      %c0_27 = arith.constant 0 : index
      %91 = vector.load %arg8[%c0_26, %c0_27] : memref<8x32xf32, #tpu.memory_space<vmem>>, vector<8x32xf32>
      tpu.vector_store %arg8[%c0_26, %c0_27], %90 {strides = array<i32>} : memref<8x32xf32, #tpu.memory_space<vmem>>, vector<8x32xf32>,
    } else {
    }
    %c0 = arith.constant 0 : index
    %c0_1 = arith.constant 0 : index
    %c0_2 = arith.constant 0 : index
    %3 = vector.load %arg2[%c0, %c0_1, %c0_2] : memref<1x16x1xi32, #tpu.memory_space<vmem>>, vector<1x16x1xi32>
    %4 = vector.shape_cast %3 : vector<1x16x1xi32> to vector<16x1xi32>
    %c0_3 = arith.constant 0 : index
    %c0_4 = arith.constant 0 : index
    %c0_5 = arith.constant 0 : index
    %5 = vector.load %arg3[%c0_3, %c0_4, %c0_5] : memref<1x1x16xi32, #tpu.memory_space<vmem>>, vector<1x1x16xi32>
    %6 = vector.shape_cast %5 : vector<1x1x16xi32> to vector<1x16xi32>
    %c0_6 = arith.constant 0 : index
    %c0_7 = arith.constant 0 : index
    %c0_8 = arith.constant 0 : index
    %7 = vector.load %arg4[%c0_6, %c0_7, %c0_8] : memref<1x16x16xf32, #tpu.memory_space<vmem>>, vector<1x16x16xf32>
    %8 = vector.shape_cast %7 : vector<1x16x16xf32> to vector<16x16xf32>
    %c0_9 = arith.constant 0 : index
    %c0_10 = arith.constant 0 : index
    %c0_11 = arith.constant 0 : index
    %9 = vector.load %arg5[%c0_9, %c0_10, %c0_11] : memref<1x8x32xf32, #tpu.memory_space<vmem>>, vector<1x8x32xf32>
    %10 = vector.shape_cast %9 : vector<1x8x32xf32> to vector<8x32xf32>
    %c0_12 = arith.constant 0 : index
    %c0_13 = arith.constant 0 : index
    %11 = vector.load %arg6[%c0_12, %c0_13] : memref<544x32xf32, #tpu.memory_space<vmem>>, vector<544x32xf32>
    %12 = tpu.iota {dimensions = array<i32: 1>} : vector<16x8xi32>
    %13 = vector.broadcast %4 : vector<16x1xi32> to vector<16x8xi32>
    %14 = arith.cmpi eq, %12, %13 : vector<16x8xi32>
    %15 = arith.extui %14 : vector<16x8xi1> to vector<16x8xi32>
    %16 = arith.sitofp %15 : vector<16x8xi32> to vector<16x8xf32>
    %cst = arith.constant dense<0.000000e+00> : vector<16x32xf32>
    %17 = tpu.matmul %16, %10, %cst {dimension_numbers = #tpu.dot_dimension_numbers<[1], [0], [0], [1], [0, 0, 1, 1], [], []>} : vector<16x8xf32>, vector<8x32xf32>, vector<16x32xf32> -> vector<16x32xf32>
    %18 = vector.extract_strided_slice %8 {offsets = [0, 0], sizes = [16, 1], strides = [1, 1]} : vector<16x16xf32> to vector<16x1xf32>
    %19 = vector.broadcast %18 : vector<16x1xf32> to vector<16x32xf32>
    %20 = arith.mulf %19, %17 : vector<16x32xf32>
    %21 = vector.extract_strided_slice %8 {offsets = [0, 1], sizes = [16, 1], strides = [1, 1]} : vector<16x16xf32> to vector<16x1xf32>
    %22 = vector.broadcast %21 : vector<16x1xf32> to vector<16x32xf32>
    %23 = arith.mulf %22, %17 : vector<16x32xf32>
    %24 = vector.extract_strided_slice %8 {offsets = [0, 2], sizes = [16, 1], strides = [1, 1]} : vector<16x16xf32> to vector<16x1xf32>
    %25 = vector.broadcast %24 : vector<16x1xf32> to vector<16x32xf32>
    %26 = arith.mulf %25, %17 : vector<16x32xf32>
    %27 = vector.extract_strided_slice %8 {offsets = [0, 3], sizes = [16, 1], strides = [1, 1]} : vector<16x16xf32> to vector<16x1xf32>
    %28 = vector.broadcast %27 : vector<16x1xf32> to vector<16x32xf32>
    %29 = arith.mulf %28, %17 : vector<16x32xf32>
    %30 = vector.extract_strided_slice %8 {offsets = [0, 4], sizes = [16, 1], strides = [1, 1]} : vector<16x16xf32> to vector<16x1xf32>
    %31 = vector.broadcast %30 : vector<16x1xf32> to vector<16x32xf32>
    %32 = arith.mulf %31, %17 : vector<16x32xf32>
    %33 = vector.extract_strided_slice %8 {offsets = [0, 5], sizes = [16, 1], strides = [1, 1]} : vector<16x16xf32> to vector<16x1xf32>
    %34 = vector.broadcast %33 : vector<16x1xf32> to vector<16x32xf32>
    %35 = arith.mulf %34, %17 : vector<16x32xf32>
    %36 = vector.extract_strided_slice %8 {offsets = [0, 6], sizes = [16, 1], strides = [1, 1]} : vector<16x16xf32> to vector<16x1xf32>
    %37 = vector.broadcast %36 : vector<16x1xf32> to vector<16x32xf32>
    %38 = arith.mulf %37, %17 : vector<16x32xf32>
    %39 = vector.extract_strided_slice %8 {offsets = [0, 7], sizes = [16, 1], strides = [1, 1]} : vector<16x16xf32> to vector<16x1xf32>
    %40 = vector.broadcast %39 : vector<16x1xf32> to vector<16x32xf32>
    %41 = arith.mulf %40, %17 : vector<16x32xf32>
    %42 = vector.extract_strided_slice %8 {offsets = [0, 8], sizes = [16, 1], strides = [1, 1]} : vector<16x16xf32> to vector<16x1xf32>
    %43 = vector.broadcast %42 : vector<16x1xf32> to vector<16x32xf32>
    %44 = arith.mulf %43, %17 : vector<16x32xf32>
    %45 = vector.extract_strided_slice %8 {offsets = [0, 9], sizes = [16, 1], strides = [1, 1]} : vector<16x16xf32> to vector<16x1xf32>
    %46 = vector.broadcast %45 : vector<16x1xf32> to vector<16x32xf32>
    %47 = arith.mulf %46, %17 : vector<16x32xf32>
    %48 = vector.extract_strided_slice %8 {offsets = [0, 10], sizes = [16, 1], strides = [1, 1]} : vector<16x16xf32> to vector<16x1xf32>
    %49 = vector.broadcast %48 : vector<16x1xf32> to vector<16x32xf32>
    %50 = arith.mulf %49, %17 : vector<16x32xf32>
    %51 = vector.extract_strided_slice %8 {offsets = [0, 11], sizes = [16, 1], strides = [1, 1]} : vector<16x16xf32> to vector<16x1xf32>
    %52 = vector.broadcast %51 : vector<16x1xf32> to vector<16x32xf32>
    %53 = arith.mulf %52, %17 : vector<16x32xf32>
    %54 = vector.extract_strided_slice %8 {offsets = [0, 12], sizes = [16, 1], strides = [1, 1]} : vector<16x16xf32> to vector<16x1xf32>
    %55 = vector.broadcast %54 : vector<16x1xf32> to vector<16x32xf32>
    %56 = arith.mulf %55, %17 : vector<16x32xf32>
    %57 = vector.extract_strided_slice %8 {offsets = [0, 13], sizes = [16, 1], strides = [1, 1]} : vector<16x16xf32> to vector<16x1xf32>
    %58 = vector.broadcast %57 : vector<16x1xf32> to vector<16x32xf32>
    %59 = arith.mulf %58, %17 : vector<16x32xf32>
    %60 = vector.extract_strided_slice %8 {offsets = [0, 14], sizes = [16, 1], strides = [1, 1]} : vector<16x16xf32> to vector<16x1xf32>
    %61 = vector.broadcast %60 : vector<16x1xf32> to vector<16x32xf32>
    %62 = arith.mulf %61, %17 : vector<16x32xf32>
    %63 = vector.extract_strided_slice %8 {offsets = [0, 15], sizes = [16, 1], strides = [1, 1]} : vector<16x16xf32> to vector<16x1xf32>
    %64 = vector.broadcast %63 : vector<16x1xf32> to vector<16x32xf32>
    %65 = arith.mulf %64, %17 : vector<16x32xf32>
    %66 = tpu.concatenate %17, %20, %23, %26, %29, %32, %35, %38, %41, %44, %47, %50, %53, %56, %59, %62 in 1 : vector<16x32xf32>, vector<16x32xf32>, vector<16x32xf32>, vector<16x32xf32>, vector<16x32xf32>, vector<16x32xf32>, vector<16x32xf32>, vector<16x32xf32>, vector<16x32xf32>, vector<16x32xf32>, vector<16x32xf32>, vector<16x32xf32>, vector<16x32xf32>, vector<16x32xf32>, vector<16x32xf32>, vector<16x32xf32> -> vector<16x512xf32>
    %67 = tpu.concatenate %66, %65 in 1 : vector<16x512xf32>, vector<16x32xf32> -> vector<16x544xf32>
    %cst_14 = arith.constant dense<0.000000e+00> : vector<16x32xf32>
    %68 = tpu.matmul %67, %11, %cst_14 {dimension_numbers = #tpu.dot_dimension_numbers<[1], [0], [0], [1], [0, 0, 1, 1], [], []>} : vector<16x544xf32>, vector<544x32xf32>, vector<16x32xf32> -> vector<16x32xf32>
    %cst_15 = arith.constant 0.176776692 : f32
    %69 = vector.broadcast %cst_15 : f32 to vector<16x32xf32>
    %70 = arith.mulf %68, %69 : vector<16x32xf32>
    %71 = vector.extract_strided_slice %8 {offsets = [0, 0], sizes = [16, 1], strides = [1, 1]} : vector<16x16xf32> to vector<16x1xf32>
    %cst_16 = arith.constant -9.990000e+02 : f32
    %72 = vector.broadcast %cst_16 : f32 to vector<16x1xf32>
    %73 = arith.cmpf oeq, %71, %72 : vector<16x1xf32>
    %cst_17 = arith.constant 0.000000e+00 : f32
    %74 = vector.shape_cast %73 : vector<16x1xi1> to vector<16x1xi1>
    %75 = vector.broadcast %74 : vector<16x1xi1> to vector<16x32xi1>
    %76 = vector.broadcast %cst_17 : f32 to vector<16x32xf32>
    %77 = arith.select %75, %76, %70 : vector<16x32xi1>, vector<16x32xf32>
    %78 = tpu.iota {dimensions = array<i32: 0>} : vector<8x16xi32>
    %79 = vector.broadcast %6 : vector<1x16xi32> to vector<8x16xi32>
    %80 = arith.cmpi eq, %78, %79 : vector<8x16xi32>
    %81 = arith.extui %80 : vector<8x16xi1> to vector<8x16xi32>
    %82 = arith.sitofp %81 : vector<8x16xi32> to vector<8x16xf32>
    %c0_18 = arith.constant 0 : index
    %c0_19 = arith.constant 0 : index
    %83 = vector.load %arg8[%c0_18, %c0_19] : memref<8x32xf32, #tpu.memory_space<vmem>>, vector<8x32xf32>
    %cst_20 = arith.constant dense<0.000000e+00> : vector<8x32xf32>
    %84 = tpu.matmul %82, %77, %cst_20 {dimension_numbers = #tpu.dot_dimension_numbers<[1], [0], [0], [1], [0, 0, 1, 1], [], []>} : vector<8x16xf32>, vector<16x32xf32>, vector<8x32xf32> -> vector<8x32xf32>
    %85 = arith.addf %83, %84 : vector<8x32xf32>
    %c0_21 = arith.constant 0 : index
    %c0_22 = arith.constant 0 : index
    %86 = vector.load %arg8[%c0_21, %c0_22] : memref<8x32xf32, #tpu.memory_space<vmem>>, vector<8x32xf32>
    tpu.vector_store %arg8[%c0_21, %c0_22], %85 {strides = array<i32>} : memref<8x32xf32, #tpu.memory_space<vmem>>, vector<8x32xf32>,
    %c0_i32_23 = arith.constant 0 : i32
    %87 = arith.cmpi eq, %arg1, %c0_i32_23 : i32
    %88 = arith.extui %87 : i1 to i32
    %c0_i32_24 = arith.constant 0 : i32
    %89 = arith.cmpi ne, %88, %c0_i32_24 : i32
    scf.if %89 {
      %c0_25 = arith.constant 0 : index
      %c0_26 = arith.constant 0 : index
      %90 = vector.load %arg8[%c0_25, %c0_26] : memref<8x32xf32, #tpu.memory_space<vmem>>, vector<8x32xf32>
      %c0_27 = arith.constant 0 : index
      %c0_28 = arith.constant 0 : index
      %c0_29 = arith.constant 0 : index
      %91 = vector.load %arg7[%c0_27, %c0_28, %c0_29] : memref<1x8x32xf32, #tpu.memory_space<vmem>>, vector<1x8x32xf32>
      %92 = vector.shape_cast %91 : vector<1x8x32xf32> to vector<8x32xf32>
      %93 = vector.shape_cast %90 : vector<8x32xf32> to vector<1x8x32xf32>
      tpu.vector_store %arg7[%c0_27, %c0_28, %c0_29], %93 {strides = array<i32>} : memref<1x8x32xf32, #tpu.memory_space<vmem>>, vector<1x8x32xf32>,
    } else {
    }
    return
  }
  func.func @transform_0(%arg0: i32, %arg1: i32) -> (i32, i32, i32) {
    %c0_i32 = arith.constant 0 : i32
    %c0_i32_0 = arith.constant 0 : i32
    return %arg0, %arg1, %c0_i32 : i32, i32, i32
  }
  func.func @transform_1(%arg0: i32, %arg1: i32) -> (i32, i32, i32) {
    %c0_i32 = arith.constant 0 : i32
    %c0_i32_0 = arith.constant 0 : i32
    return %arg0, %c0_i32, %arg1 : i32, i32, i32
  }
  func.func @transform_2(%arg0: i32, %arg1: i32) -> (i32, i32, i32) {
    %c0_i32 = arith.constant 0 : i32
    %c0_i32_0 = arith.constant 0 : i32
    return %arg0, %arg1, %c0_i32 : i32, i32, i32
  }
  func.func @transform_3(%arg0: i32, %arg1: i32) -> (i32, i32, i32) {
    %c0_i32 = arith.constant 0 : i32
    %c0_i32_0 = arith.constant 0 : i32
    %c0_i32_1 = arith.constant 0 : i32
    return %arg0, %c0_i32, %c0_i32_0 : i32, i32, i32
  }
  func.func @transform_4(%arg0: i32, %arg1: i32) -> (i32, i32) {
    %c0_i32 = arith.constant 0 : i32
    %c0_i32_0 = arith.constant 0 : i32
    %c0_i32_1 = arith.constant 0 : i32
    return %c0_i32, %c0_i32_0 : i32, i32
  }
  func.func @transform_5(%arg0: i32, %arg1: i32) -> (i32, i32, i32) {
    %c0_i32 = arith.constant 0 : i32
    %c0_i32_0 = arith.constant 0 : i32
    %c0_i32_1 = arith.constant 0 : i32
    return %arg0, %c0_i32, %c0_i32_0 : i32, i32, i32
  }
}

</mosaic_0001>

<bundles_post_ra>
// kernel: tpu_custom_call.1
= control target key start
LH: loop header
LB: loop body
LE: loop exit
PB: predicated region body
PF: predicated region fallthrough
CT: control target
= control target key end

     0   :  { %10 = vsyncpa [#allocation4], 0  ;;  %s2278_s0 = inlined_call_operand.vmem [shape: s32[2,16,1], index: 0, kind: input, shape index: {}]   ;;  %s2279_s1 = inlined_call_operand.vmem [shape: s32[2,1,16], index: 1, kind: input, shape index: {}]   ;;  %s2280_s2 = inlined_call_operand.vmem [shape: f32[2,16,16], index: 2, kind: input, shape index: {}]   ;;  %s2281_s3 = inlined_call_operand.vmem [shape: f32[2,8,32], index: 3, kind: input, shape index: {}]   ;;  %s2282_s4 = inlined_call_operand.vmem [shape: f32[544,32], index: 4, kind: input, shape index: {}]   ;;  %s2283_s5 = inlined_call_operand.hbm [shape: f32[2,8,32], index: 5, kind: output, shape index: {}]  }
   0x1   :  { %12 = vsyncpa [#allocation4 + $0x1], 0  ;;  %s1776_s18 = smov 0   ;;  %s1778_s19 = smov 0  }
   0x2   :  { %s1780_s20 = smov 0   ;;  %s1782_s21 = smov 0  }
   0x3   :  { %s1784_s22 = smov 0   ;;  %s1786_s23 = smov 0  }
   0x4 LB: > { %s1257_s24 = sadd.s32 4294967295, %s1721_s23   ;;  %s1258_s25 = sadd.s32 4294967294, %s1721_s23   ;;  %s1721_s23 = sphi %s1786_s23, %s18_s23   ;;  %s1717_s22 = sphi %s1784_s22, %s2290_s22   ;;  %s1713_s21 = sphi %s1782_s21, %s2289_s21   ;;  %s1709_s20 = sphi %s1780_s20, %s2288_s20   ;;  %s1705_s19 = sphi %s1778_s19, %s2287_s19   ;;  %s1701_s18 = sphi %s1776_s18, %s2286_s18  }
   0x5   : > { %s30_s26 = sadd.s32 1, %s1717_s22  ;;  %s168_s27 = sadd.s32 1, %s1709_s20 }
   0x6   : > { %p32_p0 = scmp.ge.s32.totalorder %s30_s26, 2  ;;  %p178_p1 = scmp.ne.s32.totalorder %s1709_s20, %s1705_s19 }
   0x7   : > { %p179_p2 = scmp.eq.s32.totalorder %s1257_s24, 1  ;;  %p184_p3 = scmp.ne.s32.totalorder %s1705_s19, %s1701_s18 }
   0x8   : > { %s2292_s26 = smov (%p32_p0, %s30_s26), 0  ;;  %p185_p5 = scmp.eq.s32.totalorder %s1258_s25, 1 }
   0x9   : > { %p1816_p4 = por %p179_p2, %p178_p1  ;;  %s165_s29 = ssub.s32 %s1717_s22, %s2292_s26 }
   0xa   : > { %p1261_p6 = scmp.ge.s32.totalorder %s1721_s23, 1  ;;  %p166_p7 = scmp.eq.s32.totalorder %s165_s29, 0 }
   0xb   : > { %p1823_p8 = por %p185_p5, %p184_p3  ;;  %p248_p9 = scmp.lt.s32.totalorder %s1721_s23, 3 }
   0xc   : > { %s1829_s6 = scalar_select %p166_p7, %s1709_s20, %s168_s27  }
   0xd   : > { %p249_p10 = pnand %p1261_p6, %p248_p9 }
   0xe   : > { %p300_p11 = scmp.lt.s32.totalorder (!%p249_p10), %s1713_s21, 1  ;;  %v409_v0 = vlaneseq (!%p249_p10)  ;;  %v1723_v1 = vmov (!%p249_p10), 0   ;;  %v1724_v2 = vmov (!%p249_p10), 4   ;;  %v1725_v9 = vmov (!%p249_p10), 12   ;;  %v357_v30 = vld [vmem:[%s2282_s4 + $0x80] sm:$0xff] (!%p249_p10)  ;;  %v358_v31 = vld [vmem:[%s2282_s4 + $0x88] sm:$0xff] (!%p249_p10) }
   0xf   : > { %252 = sbr.rel (%p249_p10) target bundleno = 978 (0x3d2), region = 40  ;;  %1553 = vset.pattern.permute.xlu0 (!%p249_p10), %v1723_v1  ;;  %1554 = vset.pattern.permute.xlu1 (!%p249_p10), %v1724_v2  ;;  %v1726_v10 = vmov (!%p249_p10), 5   ;;  %v1727_v12 = vmov (!%p249_p10), 13   ;;  %v1728_v13 = vmov (!%p249_p10), 8   ;;  %v1729_v14 = vmov (!%p249_p10), 1   ;;  %v389_v32 = vld [vmem:[%s2282_s4 + $0x180] sm:$0xff] (!%p249_p10) }
  0x10   : > { %v1835_v3 = vshrl.u32 (!%p249_p10), %v409_v0, 7  ;;  %v1730_v15 = vmov (!%p249_p10), 9   ;;  %v1731_v16 = vmov (!%p249_p10), 6   ;;  %v1732_v17 = vmov (!%p249_p10), 14   ;;  %v390_v34 = vld [vmem:[%s2282_s4 + $0x188] sm:$0xff] (!%p249_p10)  ;;  %v341_v35 = vld [vmem:[%s2282_s4] sm:$0xff] (!%p249_p10) }
  0x11   : > { %v1733_v18 = vmov (!%p249_p10), 10   ;;  %v1734_v19 = vmov (!%p249_p10), 2   ;;  %v1735_v20 = vmov (!%p249_p10), 11   ;;  %v1736_v21 = vmov (!%p249_p10), 15   ;;  %v342_v36 = vld [vmem:[%s2282_s4 + $0x8] sm:$0xff] (!%p249_p10)  ;;  %v373_v39 = vld [vmem:[%s2282_s4 + $0x100] sm:$0xff] (!%p249_p10) }
  0x12   : > { %v1737_v22 = vmov (!%p249_p10), 3   ;;  %v1738_v23 = vmov (!%p249_p10), 7   ;;  %v410_v24 = vand.u32 (!%p249_p10), 127, %v409_v0  ;;  %vm423_vm1 = vcmask (!%p249_p10), 64512   ;;  %v374_v40 = vld [vmem:[%s2282_s4 + $0x108] sm:$0xff] (!%p249_p10)  ;;  %v359_v41 = vld [vmem:[%s2282_s4 + $0x90] sm:$0xff] (!%p249_p10) }
  0x13   : > { %v1739_v26 = vmov (!%p249_p10), 0.0   ;;  %v1400_v33 = vpack.c.bf16 (!%p249_p10), %v358_v31, %v357_v30  ;;  %v1432_v37 = vpack.c.bf16 (!%p249_p10), %v390_v34, %v389_v32  ;;  %v1402_v38 = vpack.c.bf16 (!%p249_p10), %v342_v36, %v341_v35  ;;  %v360_v43 = vld [vmem:[%s2282_s4 + $0x98] sm:$0xff] (!%p249_p10)  ;;  %v391_v44 = vld [vmem:[%s2282_s4 + $0x190] sm:$0xff] (!%p249_p10)  ;;  %v361_v53 = vld [vmem:[%s2282_s4 + $0xa0] sm:$0xff] (!%p249_p10)  ;;  %s1740_s27 = smov (!%p249_p10), 32   ;;  %s1741_s10 = smov (!%p249_p10), 64  }
  0x14   : > { %v1434_v42 = vpack.c.bf16 (!%p249_p10), %v374_v40, %v373_v39  ;;  %v392_v45 = vld [vmem:[%s2282_s4 + $0x198] sm:$0xff] (!%p249_p10)  ;;  %v1404_v46 = vpack.c.bf16 (!%p249_p10), %v360_v43, %v359_v41  ;;  %v343_v48 = vld [vmem:[%s2282_s4 + $0x10] sm:$0xff] (!%p249_p10)  ;;  %v362_v54 = vld [vmem:[%s2282_s4 + $0xa8] sm:$0xff] (!%p249_p10)  ;;  %vm333_vm4 = vcmask (!%p249_p10), 261120   ;;  %s1742_s9 = smov (!%p249_p10), 96   ;;  %vm766_vm7 = vcmask (!%p249_p10), 523264  }
  0x15   : > { %1401 = vmatprep.subr.bf16.mxu1 (!%p249_p10), %v1400_v33  ;;  %v1436_v47 = vpack.c.bf16 (!%p249_p10), %v392_v45, %v391_v44  ;;  %v344_v49 = vld [vmem:[%s2282_s4 + $0x18] sm:$0xff] (!%p249_p10)  ;;  %v375_v50 = vld [vmem:[%s2282_s4 + $0x110] sm:$0xff] (!%p249_p10)  ;;  %v1408_v56 = vpack.c.bf16 (!%p249_p10), %v362_v54, %v361_v53  ;;  %v393_v57 = vld [vmem:[%s2282_s4 + $0x1a0] sm:$0xff] (!%p249_p10)  ;;  %334 = vst.msk [vmem:[#allocation2] sm:$0xff] (!%p249_p10), %vm333_vm4, %v1739_v26  ;;  %vm769_vm8 = vcmask (!%p249_p10), 785408   ;;  %vm1744_vm9 = vmmov (!%p249_p10), 0  }
  0x16   : > { %s301_s7 = scalar_select %p300_p11, %s1713_s21, 1  ;;  %1403 = vmatpush3.bf16.msra.mxu1 %v1402_v38  ;;  %v1406_v51 = vpack.c.bf16 %v344_v49, %v343_v48  ;;  %v376_v52 = vld [vmem:[%s2282_s4 + $0x118] sm:$0xff]  ;;  %v394_v58 = vld [vmem:[%s2282_s4 + $0x1a8] sm:$0xff]  ;;  %v345_v59 = vld [vmem:[%s2282_s4 + $0x20] sm:$0xff]  ;;  %vm1047_vm13 = vcmask 130048  }
  0x17   : > { %1405 = vmatprep.subr.bf16.mxu1 %v1404_v46  ;;  %v1438_v55 = vpack.c.bf16 %v376_v52, %v375_v50  ;;  %v1440_v60 = vpack.c.bf16 %v394_v58, %v393_v57  ;;  %v346_v61 = vld [vmem:[%s2282_s4 + $0x28] sm:$0xff]  ;;  %v377_v62 = vld [vmem:[%s2282_s4 + $0x120] sm:$0xff]  ;;  %v379_v30 = vld [vmem:[%s2282_s4 + $0x130] sm:$0xff]  ;;  %s1282_s16 = sshll.u32 %s1713_s21, 7  ;;  %s1745_s21 = smov [#allocation3]  }
  0x18   : > { %s1285_s8 = sshll.u32 %s301_s7, 4  ;;  %s314_s11 = scalar_lea.vmem %s2279_s1, %s301_s7  ;;  %v378_v63 = vld [vmem:[%s2282_s4 + $0x128] sm:$0xff]  ;;  %v1410_v0 = vpack.c.bf16 %v346_v61, %v345_v59  ;;  %v380_v33 = vld [vmem:[%s2282_s4 + $0x138] sm:$0xff]  ;;  %v365_v34 = vld [vmem:[%s2282_s4 + $0xc0] sm:$0xff] }
  0x19   : > { %s307_s14 = scalar_lea.vmem %s2278_s0, %s1285_s8  ;;  %s323_s17 = scalar_lea.vmem %s2280_s2, %s1285_s8  ;;  %v1846_v4 = vld [vmem:[%s314_s11] ss:$0 sm:$0xff]  ;;  %v366_v35 = vld [vmem:[%s2282_s4 + $0xc8] sm:$0xff]  ;;  %v368_v48 = vld [vmem:[%s2282_s4 + $0xd8] sm:$0xff] }
  0x1a   : > { %v335_v5 = vld [vmem:[%s307_s14] sm:$0xff]  ;;  %vm1043_vm0 = vcmp.eq.s32.totalorder %v1835_v3, %v1846_v4  ;;  %v336_v7 = vld [vmem:[%s307_s14 + $0x8] sm:$0xff]  ;;  %s1267_s24 = sshll.u32 %s301_s7, 3  ;;  %1407 = vmatpush3.bf16.msra.mxu1 %v1406_v51  ;;  %v1416_v38 = vpack.c.bf16 %v366_v35, %v365_v34  ;;  %v399_v51 = vld [vmem:[%s2282_s4 + $0x1d0] sm:$0xff]  ;;  %s296_s14 = sand.u32 1, %s1705_s19  }
  0x1b   : > { %v1848_v6 = vld [vmem:[%s323_s17] sm:$0xff]  ;;  %412 = vperm.xlu0 %1553, %v335_v5   ;;  %s328_s29 = scalar_lea.vmem %s2281_s3, %s1267_s24  ;;  %v1859_v11 = vld [vmem:[%s323_s17 + $0x8] sm:$0xff]  ;;  %v364_v5 = vld [vmem:[%s2282_s4 + $0xb8] sm:$0xff]  ;;  %1409 = vmatprep.subr.bf16.mxu1 %v1408_v56  ;;  %s1262_s15 = sshll.u32 %s296_s14, 3 }
  0x1c   : > { %548 = vperm.xlu1 %1554, %v1848_v6   ;;  %v340_v8 = vld [vmem:[%s328_s29] sm:$0xff]  ;;  %v398_v40 = vld [vmem:[%s2282_s4 + $0x1c8] sm:$0xff]  ;;  %v400_v52 = vld [vmem:[%s2282_s4 + $0x1d8] sm:$0xff]  ;;  %vm1023_vm5 = vcmp.eq.f32.partialorder %v1848_v6, -999.0  ;;  %vm1024_vm6 = vcmp.eq.f32.partialorder %v1859_v11, -999.0  ;;  %s298_s17 = scalar_lea.vmem [#allocation3], %s1262_s15  ;;  %s2230_s29 = scalar_lea.hbm %s2283_s5, %s1282_s16 }
  0x1d   : > { %1377 = vmatprep.subr.mxu0 %v340_v8  ;;  %v397_v39 = vld [vmem:[%s2282_s4 + $0x1c0] sm:$0xff]  ;;  %v350_v43 = vld [vmem:[%s2282_s4 + $0x48] sm:$0xff]  ;;  %s1142_s24 = sshll.u32 %s298_s17, 4  ;;  %s1129_s7 = scalar_lea.sflag [#allocation4], %s296_s14  ;;  %s2232_s24 = int_to_ptr.vmem [resolvable:$true] %s1142_s24 }
  0x1e   : > { %1378 = vmatpush3.msra.mxu0 %v340_v8  ;;  %v1442_v8 = vpack.c.bf16 %v378_v63, %v377_v62  ;;  %1411 = vmatpush3.bf16.msra.mxu1 %v1410_v0  ;;  %v1448_v41 = vpack.c.bf16 %v398_v40, %v397_v39  ;;  %v381_v44 = vld [vmem:[%s2282_s4 + $0x140] sm:$0xff]  ;;  %v382_v46 = vld [vmem:[%s2282_s4 + $0x148] sm:$0xff]  ;;  %v371_v39 = vld [vmem:[%s2282_s4 + $0xf0] sm:$0xff]  ;;  %s1643_s8 = scalar_lea.vmem %s2232_s24, 128 }
  0x1f   : > { %415 = vperm.xlu0 %1553, %v336_v7   ;;  %1433 = vmatprep.subr.bf16.mxu0 %v1432_v37  ;;  %v395_v7 = vld [vmem:[%s2282_s4 + $0x1b0] sm:$0xff]  ;;  %v1446_v37 = vpack.c.bf16 %v380_v33, %v379_v30  ;;  %v1450_v49 = vpack.c.bf16 %v382_v46, %v381_v44  ;;  %v401_v30 = vld [vmem:[%s2282_s4 + $0x1e0] sm:$0xff]  ;;  %v386_v34 = vld [vmem:[%s2282_s4 + $0x168] sm:$0xff]  ;;  %p1644_p12 = scmp.ne.s32.totalorder %s2232_s24, %s1643_s8 }
  0x20   : > { %1555 = vset.pattern.permute.xlu1 %v1725_v9  ;;  %v372_v40 = vld [vmem:[%s2282_s4 + $0xf8] sm:$0xff]  ;;  %v403_v44 = vld [vmem:[%s2282_s4 + $0x1f0] sm:$0xff] }
  0x21   : > { %628 = vperm.xlu1 %1555, %v1848_v6   ;;  %p1645_p13 = pnand %p1644_p12, %p1816_p4 }
  0x23   : > { %507 = vperm.xlu0 %1553, %v1848_v6   ;;  %p1646_p0 = pneg %p1645_p13 }
  0x25   : > { %1556 = vset.pattern.permute.xlu1 %v1726_v10 }
  0x26   : > { %558 = vperm.xlu1 %1556, %v1848_v6  }
  0x27   : > { %1563 = vset.pattern.permute.xlu0 %v1725_v9 }
  0x28   : > { %632 = vperm.xlu0 %1563, %v1859_v11  }
  0x2a   : > { %1557 = vset.pattern.permute.xlu1 %v1727_v12 }
  0x2b   : > { %638 = vperm.xlu1 %1557, %v1848_v6  }
  0x2c   : > { %1564 = vset.pattern.permute.xlu0 %v1728_v13 }
  0x2d   : > { %588 = vperm.xlu0 %1564, %v1848_v6  }
  0x2f   : > { %1558 = vset.pattern.permute.xlu1 %v1729_v14 }
  0x30   : > { %518 = vperm.xlu1 %1558, %v1848_v6  }
  0x31   : > { %592 = vperm.xlu0 %1564, %v1859_v11  }
  0x34   : > { %1559 = vset.pattern.permute.xlu1 %v1730_v15 }
  0x35   : > { %598 = vperm.xlu1 %1559, %v1848_v6   ;;  %1567 = vset.pattern.permute.xlu0 %v1731_v16 }
  0x36   : > { %568 = vperm.xlu0 %1567, %v1848_v6  }
  0x39   : > { %1560 = vset.pattern.permute.xlu1 %v1732_v17 }
  0x3a   : > { %648 = vperm.xlu1 %1560, %v1848_v6   ;;  %572 = vperm.xlu0 %1567, %v1859_v11  }
  0x3e   : > { %1561 = vset.pattern.permute.xlu1 %v1733_v18  ;;  %1570 = vset.pattern.permute.xlu0 %v1734_v19 }
  0x3f   : > { %608 = vperm.xlu1 %1561, %v1848_v6   ;;  %528 = vperm.xlu0 %1570, %v1848_v6  }
  0x43   : > { %1562 = vset.pattern.permute.xlu1 %v1724_v2  ;;  %532 = vperm.xlu0 %1570, %v1859_v11   ;;  %v363_v2 = vld [vmem:[%s2282_s4 + $0xb0] sm:$0xff] }
  0x44   : > { %552 = vperm.xlu1 %1562, %v1859_v11   ;;  %v1412_v9 = vpack.c.bf16 %v364_v5, %v363_v2 }
  0x46   : > { %1413 = vmatprep.subr.bf16.mxu1 %v1412_v9 }
  0x47   : > { %1575 = vset.pattern.permute.xlu0 %v1735_v20 }
  0x48   : > { %1565 = vset.pattern.permute.xlu1 %v1723_v1  ;;  %618 = vperm.xlu0 %1575, %v1848_v6  }
  0x49   : > { %512 = vperm.xlu1 %1565, %v1859_v11  }
  0x4c   : > { %622 = vperm.xlu0 %1575, %v1859_v11  }
  0x4d   : > { %1566 = vset.pattern.permute.xlu1 %v1726_v10  ;;  %v396_v10 = vld [vmem:[%s2282_s4 + $0x1b8] sm:$0xff] }
  0x4e   : > { %562 = vperm.xlu1 %1566, %v1859_v11  }
  0x50   : > { %1580 = vset.pattern.permute.xlu0 %v1736_v21 }
  0x51   : > { %662 = vperm.xlu0 %1580, %v1859_v11  }
  0x52   : > { %1568 = vset.pattern.permute.xlu1 %v1727_v12  ;;  %v1444_v12 = vpack.c.bf16 %v396_v10, %v395_v7  ;;  %v351_v10 = vld [vmem:[%s2282_s4 + $0x50] sm:$0xff] }
  0x53   : > { %642 = vperm.xlu1 %1568, %v1859_v11  }
  0x55   : > { %1642 = vset.pattern.permute.xlu0 %v1723_v1 }
  0x57   : > { %1569 = vset.pattern.permute.xlu1 %v1729_v14 }
  0x58   : > { %522 = vperm.xlu1 %1569, %v1859_v11  }
  0x5c   : > { %1571 = vset.pattern.permute.xlu1 %v1730_v15 }
  0x5d   : > { %602 = vperm.xlu1 %1571, %v1859_v11  }
  0x61   : > { %1572 = vset.pattern.permute.xlu1 %v1732_v17 }
  0x62   : > { %652 = vperm.xlu1 %1572, %v1859_v11  }
  0x66   : > { %1573 = vset.pattern.permute.xlu1 %v1733_v18 }
  0x67   : > { %612 = vperm.xlu1 %1573, %v1859_v11  }
  0x6b   : > { %1574 = vset.pattern.permute.xlu1 %v1737_v22 }
  0x6c   : > { %538 = vperm.xlu1 %1574, %v1848_v6  }
  0x70   : > { %1576 = vset.pattern.permute.xlu1 %v1738_v23 }
  0x71   : > { %578 = vperm.xlu1 %1576, %v1848_v6  }
  0x75   : > { %1577 = vset.pattern.permute.xlu1 %v1737_v22 }
  0x76   : > { %542 = vperm.xlu1 %1577, %v1859_v11  }
  0x7a   : > { %1578 = vset.pattern.permute.xlu1 %v1738_v23 }
  0x7b   : > { %582 = vperm.xlu1 %1578, %v1859_v11  }
  0x7f   : > { %1579 = vset.pattern.permute.xlu1 %v1736_v21 }
  0x80   : > { %658 = vperm.xlu1 %1579, %v1848_v6  }
  0x84   : > { %1641 = vset.pattern.permute.xlu1 %v1723_v1 }
  0x9a   : > { %v413_v25 = vpop.permute.xlu0 %412 }
  0x9b   : > { %vm417_vm2 = vcmp.eq.s32.totalorder %v410_v24, %v413_v25  ;;  %v549_v13 = vpop.permute.xlu1 %548 }
  0x9c   : > { %v1268_v27 = vsel %vm417_vm2, 1.0, %v1739_v26 }
  0x9d   : > { %1379 = vmatprep.mubr.msk.f32.mxu0 %vm423_vm1, %v1268_v27 }
  0x9e   : > { %v416_v28 = vpop.permute.xlu0 %415 }
  0x9f   : > { %vm418_vm3 = vcmp.eq.s32.totalorder %v410_v24, %v416_v28  ;;  %v347_v28 = vld [vmem:[%s2282_s4 + $0x30] sm:$0xff] }
  0xa0   : > { %v1269_v29 = vsel %vm418_vm3, 1.0, %v1739_v26  ;;  %v629_v14 = vpop.permute.xlu1 %628 }
  0xa1   : > { %1380 = vmatmul.mubr.msk.f32.vlgmr.msra.gmra.mrb[0].mxu0 %vm423_vm1, %v1269_v29  ;;  %v348_v29 = vld [vmem:[%s2282_s4 + $0x38] sm:$0xff] }
  0xa2   : > { %1435 = vmatpush3.bf16.msra.mxu0 %v1434_v42  ;;  %v508_v22 = vpop.permute.xlu0 %507  ;;  %v1414_v32 = vpack.c.bf16 %v348_v29, %v347_v28  ;;  %v349_v42 = vld [vmem:[%s2282_s4 + $0x40] sm:$0xff] }
  0xa3   : > { %1437 = vmatprep.subr.bf16.mxu0 %v1436_v47  ;;  %v1418_v45 = vpack.c.bf16 %v350_v43, %v349_v42  ;;  %v367_v47 = vld [vmem:[%s2282_s4 + $0xd0] sm:$0xff] }
  0xa4   : > { %1415 = vmatpush3.bf16.msra.mxu1 %v1414_v32  ;;  %v1420_v50 = vpack.c.bf16 %v368_v48, %v367_v47  ;;  %v353_v32 = vld [vmem:[%s2282_s4 + $0x60] sm:$0xff] }
  0xa5   : > { %v1979_v15 = vpop.permute.xlu1 %558  ;;  %1417 = vmatprep.subr.bf16.mxu1 %v1416_v38 }
  0xa6   : > { %1439 = vmatpush3.bf16.msra.mxu0 %v1438_v55  ;;  %v1452_v55 = vpack.c.bf16 %v400_v52, %v399_v51  ;;  %v356_v51 = vld [vmem:[%s2282_s4 + $0x78] sm:$0xff]  ;;  %v387_v52 = vld [vmem:[%s2282_s4 + $0x170] sm:$0xff] }
  0xa7   : > { %1441 = vmatprep.subr.bf16.mxu0 %v1440_v60  ;;  %v633_v23 = vpop.permute.xlu0 %632 }
  0xa8   : > { %1419 = vmatpush3.bf16.msra.mxu1 %v1418_v45  ;;  %v404_v45 = vld [vmem:[%s2282_s4 + $0x1f8] sm:$0xff] }
  0xa9   : > { %1421 = vmatprep.subr.bf16.mxu1 %v1420_v50  ;;  %v1428_v50 = vpack.c.bf16 %v372_v40, %v371_v39 }
  0xaa   : > { %1443 = vmatpush3.bf16.msra.mxu0 %v1442_v8  ;;  %v1981_v16 = vpop.permute.xlu1 %638 }
  0xab   : > { %1445 = vmatprep.subr.bf16.mxu0 %v1444_v12  ;;  %v352_v12 = vld [vmem:[%s2282_s4 + $0x58] sm:$0xff] }
  0xac   : > { %v589_v25 = vpop.permute.xlu0 %588 }
  0xae   : > { %1447 = vmatpush3.bf16.msra.mxu0 %v1446_v37 }
  0xaf   : > { %v1983_v17 = vpop.permute.xlu1 %518  ;;  %1449 = vmatprep.subr.bf16.mxu0 %v1448_v41 }
  0xb0   : > { %v593_v31 = vpop.permute.xlu0 %592 }
  0xb2   : > { %1451 = vmatpush3.bf16.msra.mxu0 %v1450_v49 }
  0xb3   : > { %1453 = vmatprep.subr.bf16.mxu0 %v1452_v55 }
  0xb4   : > { %v1985_v18 = vpop.permute.xlu1 %598 }
  0xb5   : > { %v569_v53 = vpop.permute.xlu0 %568 }
  0xb9   : > { %v1987_v19 = vpop.permute.xlu1 %648 }
  0xbe   : > { %v1989_v20 = vpop.permute.xlu1 %608 }
  0xc3   : > { %v553_v21 = vpop.permute.xlu1 %552 }
  0xc8   : > { %v513_v24 = vpop.permute.xlu1 %512 }
  0xcd   : > { %v563_v27 = vpop.permute.xlu1 %562 }
  0xd2   : > { %v643_v36 = vpop.permute.xlu1 %642 }
  0xd7   : > { %v2043_v56 = vpop.permute.xlu1 %522 }
 0x174   : > { %v2041_v54 = vpop.f32.mrb[0].mxu0 }
 0x175   : > { %v2045_v57 = vpop.f32.mrb[1].mxu0  ;;  %v556_v58 = vmul.f32 %v2041_v54, %v553_v21  ;;  %v636_v59 = vmul.f32 %v2041_v54, %v633_v23  ;;  %v516_v60 = vmul.f32 %v2041_v54, %v513_v24  ;;  %v596_v61 = vmul.f32 %v2041_v54, %v593_v31  ;;  %v2068_v21 = vpop.permute.xlu0 %572  ;;  %v384_v23 = vld [vmem:[%s2282_s4 + $0x158] sm:$0xff]  ;;  %v369_v24 = vld [vmem:[%s2282_s4 + $0xe0] sm:$0xff]  ;;  %v402_v31 = vld [vmem:[%s2282_s4 + $0x1e8] sm:$0xff] }
 0x176   : > { %v566_v63 = vmul.f32 %v2041_v54, %v563_v27  ;;  %v646_v0 = vmul.f32 %v2041_v54, %v643_v36  ;;  %v555_v5 = vmul.f32 %v549_v13, %v2045_v57  ;;  %v635_v7 = vmul.f32 %v629_v14, %v2045_v57  ;;  %v383_v13 = vld [vmem:[%s2282_s4 + $0x150] sm:$0xff]  ;;  %v603_v14 = vpop.permute.xlu1 %602 }
 0x177   : > { %v1581_v62 = vpack.i.bf16 %v636_v59, %v556_v58  ;;  %v1586_v2 = vpack.i.bf16 %v596_v61, %v516_v60  ;;  %v515_v8 = vmul.f32 %v508_v22, %v2045_v57  ;;  %v595_v9 = vmul.f32 %v589_v25, %v2045_v57  ;;  %v370_v25 = vld [vmem:[%s2282_s4 + $0xe8] sm:$0xff]  ;;  %v405_v59 = vld [vmem:[%s2282_s4 + $0x200] sm:$0xff] }
 0x178   : > { %v1591_v22 = vpack.i.bf16 %v646_v0, %v566_v63  ;;  %v1596_v27 = vpack.i.bf16 %v635_v7, %v555_v5  ;;  %v565_v28 = vmul.f32 %v1979_v15, %v2045_v57  ;;  %v645_v29 = vmul.f32 %v1981_v16, %v2045_v57  ;;  %v354_v15 = vld [vmem:[%s2282_s4 + $0x68] sm:$0xff]  ;;  %v385_v16 = vld [vmem:[%s2282_s4 + $0x160] sm:$0xff] }
 0x179   : > { %1582 = vrot.lane.b32.xlu1 %v1581_v62, %s1740_s27  ;;  %1587 = vrot.lane.b32.xlu0 %v1586_v2, %s1740_s27  ;;  %v1601_v33 = vpack.i.bf16 %v595_v9, %v515_v8  ;;  %v525_v35 = vmul.f32 %v1983_v17, %v2045_v57  ;;  %v1422_v36 = vpack.c.bf16 %v352_v12, %v351_v10  ;;  %v406_v60 = vld [vmem:[%s2282_s4 + $0x208] sm:$0xff] }
 0x17a   : > { %v1454_v37 = vpack.c.bf16 %v384_v23, %v383_v13  ;;  %v1424_v38 = vpack.c.bf16 %v370_v25, %v369_v24  ;;  %v605_v41 = vmul.f32 %v1985_v18, %v2045_v57  ;;  %v575_v42 = vmul.f32 %v569_v53, %v2045_v57  ;;  %v355_v18 = vld [vmem:[%s2282_s4 + $0x70] sm:$0xff]  ;;  %v653_v49 = vpop.permute.xlu1 %652  ;;  %v388_v53 = vld [vmem:[%s2282_s4 + $0x178] sm:$0xff] }
 0x17b   : > { %v655_v43 = vmul.f32 %v1987_v19, %v2045_v57  ;;  %v1456_v17 = vpack.c.bf16 %v402_v31, %v401_v30  ;;  %v1606_v46 = vpack.i.bf16 %v645_v29, %v565_v28  ;;  %1423 = vmatpush3.bf16.msra.mxu1 %v1422_v36  ;;  %v1426_v47 = vpack.c.bf16 %v354_v15, %v353_v32  ;;  %v529_v19 = vpop.permute.xlu0 %528 }
 0x17c   : > { %1455 = vmatpush3.bf16.msra.mxu0 %v1454_v37  ;;  %v1458_v48 = vpack.c.bf16 %v386_v34, %v385_v16  ;;  %1425 = vmatprep.subr.bf16.mxu1 %v1424_v38  ;;  %v526_v55 = vmul.f32 %v2041_v54, %v2043_v56  ;;  %v1460_v58 = vpack.c.bf16 %v404_v45, %v403_v44  ;;  %v1026_v25 = vsel %vm1024_vm6, 1, %v1723_v1 }
 0x17d   : > { %1592 = vrot.lane.b32.xlu1 %v1591_v22, %s1741_s10  ;;  %1597 = vrot.lane.b32.xlu0 %v1596_v27, %s1740_s27  ;;  %v1611_v61 = vpack.i.bf16 %v605_v41, %v525_v35  ;;  %v1621_v62 = vpack.i.bf16 %v655_v43, %v575_v42  ;;  %v535_v63 = vmul.f32 %v529_v19, %v2045_v57 }
 0x17e   : > { %1457 = vmatprep.subr.bf16.mxu0 %v1456_v17  ;;  %v615_v0 = vmul.f32 %v1989_v20, %v2045_v57  ;;  %v606_v2 = vmul.f32 %v2041_v54, %v603_v14  ;;  %v1430_v56 = vpack.c.bf16 %v356_v51, %v355_v18  ;;  %v1462_v5 = vpack.c.bf16 %v388_v53, %v387_v52  ;;  %v613_v8 = vpop.permute.xlu1 %612 }
 0x17f   : > { %1427 = vmatpush3.bf16.msra.mxu1 %v1426_v47  ;;  %v2148_v7 = vpack.c.bf16 %v406_v60, %v405_v59  ;;  %v533_v9 = vpop.permute.xlu0 %532  ;;  %v576_v20 = vmul.f32 %v2041_v54, %v2068_v21  ;;  %v656_v12 = vmul.f32 %v2041_v54, %v653_v49  ;;  %v616_v22 = vmul.f32 %v2041_v54, %v613_v8  ;;  %v407_v47 = vld [vmem:[%s2282_s4 + $0x210] sm:$0xff] }
 0x180   : > { %1459 = vmatpush3.bf16.msra.mxu0 %v1458_v48  ;;  %1429 = vmatprep.subr.bf16.mxu1 %v1428_v50  ;;  %v1626_v10 = vpack.i.bf16 %v615_v0, %v535_v63  ;;  %v1616_v13 = vpack.i.bf16 %v606_v2, %v526_v55  ;;  %v536_v14 = vmul.f32 %v2041_v54, %v533_v9  ;;  %v1025_v21 = vsel %vm1023_vm5, 1, %v1723_v1  ;;  %v408_v48 = vld [vmem:[%s2282_s4 + $0x218] sm:$0xff] }
 0x181   : > { %1602 = vrot.lane.b32.xlu1 %v1601_v33, %s1740_s27  ;;  %1607 = vrot.lane.b32.xlu0 %v1606_v46, %s1741_s10  ;;  %v1631_v23 = vpack.i.bf16 %v656_v12, %v576_v20 }
 0x182   : > { %1461 = vmatprep.subr.bf16.mxu0 %v1460_v58  ;;  %v1636_v24 = vpack.i.bf16 %v616_v22, %v536_v14  ;;  %v539_v27 = vpop.permute.xlu1 %538 }
 0x183   : > { %1431 = vmatpush3.bf16.msra.mxu1 %v1430_v56  ;;  %v619_v30 = vpop.permute.xlu0 %618  ;;  %v545_v40 = vmul.f32 %v539_v27, %v2045_v57 }
 0x184   : > { %1463 = vmatpush3.bf16.msra.mxu0 %v1462_v5  ;;  %1465 = vmatprep.subr.bf16.mxu1 %v2148_v7  ;;  %v625_v41 = vmul.f32 %v619_v30, %v2045_v57 }
 0x185   : > { %1622 = vrot.lane.b32.xlu1 %v1621_v62, %s1742_s9  ;;  %1612 = vrot.lane.b32.xlu0 %v1611_v61, %s1741_s10  ;;  %v1468_v62 = vpack.c.bf16 %v408_v48, %v407_v47 }
 0x186   : > { %v579_v28 = vpop.permute.xlu1 %578 }
 0x187   : > { %v623_v32 = vpop.permute.xlu0 %622  ;;  %v585_v42 = vmul.f32 %v579_v28, %v2045_v57 }
 0x188   : > { %v626_v46 = vmul.f32 %v2041_v54, %v623_v32 }
 0x189   : > { %1627 = vrot.lane.b32.xlu1 %v1626_v10, %s1742_s9  ;;  %1617 = vrot.lane.b32.xlu0 %v1616_v13, %s1741_s10 }
 0x18a   : > { %v543_v29 = vpop.permute.xlu1 %542 }
 0x18b   : > { %v2164_v6 = vpop.permute.xlu0 %662  ;;  %v546_v45 = vmul.f32 %v2041_v54, %v543_v29 }
 0x18d   : > { %1632 = vrot.lane.b32.xlu1 %v1631_v23, %s1742_s9  ;;  %1637 = vrot.lane.b32.xlu0 %v1636_v24, %s1742_s9  ;;  %s1647_s9 = sshll.u32 %s1745_s21, 4  ;;  %s1648_s9 = int_to_ptr.vmem [resolvable:$false] %s1647_s9 }
 0x18e   : > { %v583_v31 = vpop.permute.xlu1 %582  ;;  %s1649_s10 = scalar_lea.vmem %s1648_s9, 256  ;;  %p1650_p1 = scmp.lt.s32.totalorder %s2232_s24, %s1648_s9 }
 0x18f   : > { %v586_v61 = vmul.f32 %v2041_v54, %v583_v31  ;;  %p1651_p2 = scmp.lt.s32.totalorder %s1649_s10, %s1643_s8 }
 0x191   : > { %1028 = vperm.xlu1 %1641, %v1025_v21   ;;  %1031 = vperm.xlu0 %1642, %v1026_v25   ;;  %p1652_p3 = por %p1651_p2, %p1650_p1 }
 0x192   : > { %v2162_v33 = vpop.permute.xlu1 %658 }
 0x193   : > { %p1653_p5 = pnand %p1652_p3, %p1646_p0 }
 0x1eb   : > { %v1583_v15 = vpop.permute.xlu1 %1582  ;;  %v2166_v11 = vpop.permute.xlu0 %1587 }
 0x1ec   : > { %v1585_v63 = vunpack.i.h.bf16 %v1583_v15  ;;  %v1584_v0 = vunpack.i.l.bf16 %v1583_v15  ;;  %v1590_v2 = vunpack.i.h.bf16 %v2166_v11  ;;  %v1589_v56 = vunpack.i.l.bf16 %v2166_v11 }
 0x1ee   : > { %v773_v29 = vsel %vm333_vm4, %v546_v45, %v1584_v0  ;;  %v785_v30 = vsel %vm333_vm4, %v626_v46, %v1585_v63  ;;  %v765_v11 = vsel %vm333_vm4, %v2041_v54, %v1589_v56  ;;  %v1275_v0 = vsel %vm1043_vm0, 1.0, %v1739_v26 }
 0x1ef   : > { %v2168_v16 = vpop.permute.xlu1 %1592  ;;  %v1598_v34 = vpop.permute.xlu0 %1597 }
 0x1f0   : > { %v1600_v35 = vunpack.i.h.bf16 %v1598_v34  ;;  %v1599_v1 = vunpack.i.l.bf16 %v1598_v34  ;;  %v1595_v13 = vunpack.i.h.bf16 %v2168_v16  ;;  %v1594_v14 = vunpack.i.l.bf16 %v2168_v16 }
 0x1f1   : > { %v779_v16 = vsel %vm333_vm4, %v586_v61, %v1590_v2  ;;  %v1046_v2 = vld [vmem:[#allocation2] sm:$0xff] }
 0x1f2   : > { %v772_v17 = vsel %vm333_vm4, %v545_v40, %v1599_v1  ;;  %v784_v44 = vsel %vm333_vm4, %v625_v41, %v1600_v35  ;;  %v775_v1 = vsel %vm766_vm7, %v773_v29, %v1594_v14 }
 0x1f3   : > { %v1603_v36 = vpop.permute.xlu1 %1602  ;;  %v1608_v37 = vpop.permute.xlu0 %1607 }
 0x1f4   : > { %v1610_v38 = vunpack.i.h.bf16 %v1608_v37  ;;  %v1609_v39 = vunpack.i.l.bf16 %v1608_v37  ;;  %v1605_v18 = vunpack.i.h.bf16 %v1603_v36  ;;  %v1604_v49 = vunpack.i.l.bf16 %v1603_v36 }
 0x1f5   : > { %v787_v36 = vsel %vm766_vm7, %v785_v30, %v1595_v13 }
 0x1f6   : > { %v774_v55 = vsel %vm766_vm7, %v772_v17, %v1609_v39  ;;  %v786_v58 = vsel %vm766_vm7, %v784_v44, %v1610_v38  ;;  %v778_v8 = vsel %vm333_vm4, %v585_v42, %v1605_v18  ;;  %v764_v12 = vsel %vm333_vm4, %v2045_v57, %v1604_v49 }
 0x1f7   : > { %v1623_v43 = vpop.permute.xlu1 %1622  ;;  %v1613_v51 = vpop.permute.xlu0 %1612  ;;  %v665_v42 = vmul.f32 %v2162_v33, %v2045_v57  ;;  %v1743_v17 = vmov 0.0|0.0  }
 0x1f8   : > { %v1625_v19 = vunpack.i.h.bf16 %v1623_v43  ;;  %v1624_v50 = vunpack.i.l.bf16 %v1623_v43  ;;  %v1615_v52 = vunpack.i.h.bf16 %v1613_v51  ;;  %v1614_v53 = vunpack.i.l.bf16 %v1613_v51  ;;  %1472 = vmatprep.subr.bf16.mxu0 %v1743_v17 }
 0x1f9   : > { %v666_v43 = vmul.f32 %v2041_v54, %v2164_v6 }
 0x1fa   : > { %v776_v59 = vsel %vm769_vm8, %v774_v55, %v1624_v50  ;;  %v788_v60 = vsel %vm769_vm8, %v786_v58, %v1625_v19  ;;  %v767_v22 = vsel %vm766_vm7, %v764_v12, %v1614_v53  ;;  %v780_v23 = vsel %vm766_vm7, %v778_v8, %v1615_v52 }
 0x1fb   : > { %v1628_v5 = vpop.permute.xlu1 %1627  ;;  %860 = vmatprep.mubr.f32.mxu1 %v776_v59  ;;  %935 = vmatprep.mubr.f32.mxu0 %v788_v60  ;;  %v1618_v20 = vpop.permute.xlu0 %1617 }
 0x1fc   : > { %v1630_v9 = vunpack.i.h.bf16 %v1628_v5  ;;  %v1629_v10 = vunpack.i.l.bf16 %v1628_v5  ;;  %v1620_v24 = vunpack.i.h.bf16 %v1618_v20  ;;  %v1619_v21 = vunpack.i.l.bf16 %v1618_v20 }
 0x1fe   : > { %v770_v25 = vsel %vm769_vm8, %v767_v22, %v1629_v10  ;;  %v782_v27 = vsel %vm769_vm8, %v780_v23, %v1630_v9  ;;  %v768_v39 = vsel %vm766_vm7, %v765_v11, %v1619_v21 }
 0x1ff   : > { %v1633_v28 = vpop.permute.xlu1 %1632  ;;  %861 = vmatmul.mubr.f32.vlgmr.msra.gmra.mrb[0].mxu1 %v770_v25  ;;  %936 = vmatmul.mubr.f32.vlgmr.msra.gmra.mrb[2].mxu0 %v782_v27  ;;  %v1638_v15 = vpop.permute.xlu0 %1637 }
 0x200   : > { %v1635_v31 = vunpack.i.h.bf16 %v1633_v28  ;;  %v1634_v32 = vunpack.i.l.bf16 %v1633_v28  ;;  %1467 = vmatpush3.bf16.msra.mxu1 %v2148_v7  ;;  %v1640_v34 = vunpack.i.h.bf16 %v1638_v15  ;;  %v1639_v35 = vunpack.i.l.bf16 %v1638_v15 }
 0x201   : > { %1469 = vmatprep.subr.bf16.mxu1 %v1468_v62  ;;  %v781_v7 = vsel %vm766_vm7, %v779_v16, %v1620_v24 }
 0x202   : > { %v777_v37 = vsel %vm769_vm8, %v775_v1, %v1634_v32  ;;  %v789_v38 = vsel %vm769_vm8, %v787_v36, %v1635_v31  ;;  %v771_v40 = vsel %vm769_vm8, %v768_v39, %v1639_v35  ;;  %v783_v41 = vsel %vm769_vm8, %v781_v7, %v1640_v34 }
 0x203   : > { %865 = vmatprep.mubr.f32.mxu1 %v777_v37  ;;  %940 = vmatprep.mubr.f32.mxu0 %v789_v38 }
 0x204   : > { %866 = vmatmul.mubr.f32.gmra.mrb[2].mxu1 %v771_v40  ;;  %941 = vmatmul.mubr.f32.gmra.mrb[4].mxu0 %v783_v41 }
 0x205   : > { %1471 = vmatpush3.bf16.msra.mxu1 %v1468_v62  ;;  %1390 = vmatprep.mubr.msk.f32.mxu1 %vm333_vm4, %v665_v42 }
 0x206   : > { %1397 = vmatprep.mubr.msk.f32.mxu0 %vm1744_vm9, %v1739_v26 }
 0x208   : > { %1391 = vmatmul.mubr.msk.f32.vlgmr.msra.gmra.mrb[4].mxu1 %vm333_vm4, %v666_v43 }
 0x210   : > { %v1029_v6 = vpop.permute.xlu1 %1028  ;;  %v1032_v52 = vpop.permute.xlu0 %1031 }
 0x211   : > { %vm1287_vm10 = vcmp.ne.s32.totalorder %v1029_v6, 1  ;;  %vm1288_vm11 = vcmp.ne.s32.totalorder %v1032_v52, 1 }
 0x212   : > { %vm1474_vm12 = vmpackc.low %vm1288_vm11, %vm1287_vm10 }
 0x2d2   : > { %v1324_v44 = vpop.f32.mrb[0].mxu1  ;;  %v1362_v45 = vpop.f32.mrb[2].mxu0 }
 0x2d3   : > { %v1325_v46 = vpop.f32.mrb[1].mxu1  ;;  %v1363_v47 = vpop.f32.mrb[3].mxu0 }
 0x2d4   : > { %v1326_v57 = vadd.f32 %v1325_v46, %v1324_v44  ;;  %v1364_v33 = vadd.f32 %v1363_v47, %v1362_v45 }
 0x2d6   : > { %v938_v48 = vadd.f32 %v1364_v33, %v1326_v57 }
 0x2d7   : > { %v1327_v18 = vpop.f32.mrb[2].mxu1  ;;  %v1365_v49 = vpop.f32.mrb[4].mxu0 }
 0x2d8   : > { %v1328_v19 = vpop.f32.mrb[3].mxu1  ;;  %v1366_v50 = vpop.f32.mrb[5].mxu0 }
 0x2d9   : > { %v1329_v51 = vadd.f32 %v1328_v19, %v1327_v18  ;;  %v1367_v54 = vadd.f32 %v1366_v50, %v1365_v49 }
 0x2db   : > { %v943_v53 = vadd.f32 %v1367_v54, %v1329_v51  ;;  %v1392_v55 = vpop.f32.mrb[4].mxu1 }
 0x2dc   : > { %v1012_v58 = vpop.f32.mrb[5].mxu1 }
 0x2dd   : > { %v1018_v59 = vadd.f32 %v1392_v55, %v943_v53  ;;  %v1013_v60 = vadd.f32 %v1012_v58, %v938_v48 }
 0x2df   : > { %v1022_v61 = vmul.f32 0.17677669, %v1018_v59  ;;  %v1021_v62 = vmul.f32 0.17677669, %v1013_v60 }
 0x2e1   : > { %v1473_v63 = vpack.c.bf16 %v1022_v61, %v1021_v62 }
 0x2e3   : > { %1475 = vmatpush3.bf16.msk.msra.mxu0 %vm1474_vm12, %v1473_v63 }
 0x2e6   : > { %1398 = vmatmul.mubr.msk.f32.vlgmr.msra.gmra.mrb[6].mxu0 %vm1047_vm13, %v1275_v0 }
 0x3b9   : > { %v1117_v56 = vpop.f32.mrb[6].mxu0 }
 0x3ba   : > { %v1121_v5 = vadd.f32 %v1117_v56, %v1046_v2  ;;  %v1399_v8 = vpop.f32.mrb[7].mxu0 }
 0x3bc   : > { %1122 = vst.msk [vmem:[#allocation2] sm:$0xff] %vm333_vm4, %v1121_v5 }
 0x3c3   : > { %v1126_v3 = vld [vmem:[#allocation2] sm:$0xff] }
 0x3c4   : > { %1127 = vst.msk [vmem:[%s298_s17] sm:$0xff] %vm333_vm4, %v1126_v3 }
 0x3c5   : > { %1656 = shalt.err (!%p1653_p5)
}
 0x3c6   : > { %s1657_s11 = scalar_lea.hbm %s2230_s29, 128  ;;  %s1661_s14 = scalar_lea.hbm %s2283_s5, 256 }
 0x3c7   : > { %p1658_p6 = scmp.ne.s32.totalorder %s2230_s29, %s1657_s11  ;;  %p1662_p10 = scmp.lt.u32.totalorder %s2230_s29, %s2283_s5 }
 0x3c8   : > { %p1663_p11 = scmp.lt.u32.totalorder %s1661_s14, %s1657_s11  ;;  %p1665_p13 = scmp.lt.u32.totalorder %s1657_s11, %s2230_s29 }
 0x3c9   : > { %p1659_p7 = pnand %p1658_p6, %p1816_p4 }
 0x3ca   : > { %p1664_p12 = por %p1663_p11, %p1662_p10 }
 0x3cb   : > { %p1660_p9 = pneg %p1659_p7 }
 0x3cc   : > { %p1666_p0 = por %p1665_p13, %p1664_p12 }
 0x3ce   : > { %p1667_p1 = pnand %p1666_p0, %p1660_p9 }
 0x3d0   : > { %1670 = shalt.err (!%p1667_p1)
}
 0x3d1   : > { %1476 = dma.vmem_to_hbm [thread:$0]  (%p1816_p4), %s2232_s24, 128, %s2230_s29, %s1129_s7  }
 0x3d2 PF: > { %p1482_p2 = scmp.ge.s32.totalorder %s1721_s23, 2  ;;  %s1154_s17 = sand.u32 1, %s1701_s18  }
 0x3d3   : > { %s1155_s25 = scalar_lea.sflag [#allocation4], %s1154_s17 }
 0x3d4   : > { %p1479_p3 = pnand %p1482_p2, %p1823_p8 }
 0x3d6   : > { %1696 = dma.done.wait (!%p1479_p3), %s1155_s25, 128  }
 0x3d7   : > { %1698 = vsyncadd (!%p1479_p3), %s1155_s25, 4294967168  ;;  %s18_s23 = sadd.s32 1, %s1721_s23   ;;  %s2286_s18 = smov %s1705_s19 }
 0x3d8   : > { %p15_p5 = scmp.ge.s32.totalorder %s18_s23, 4   ;;  %s2287_s19 = smov %s1709_s20 }
 0x3d9   : > { %s2288_s20 = smov %s1829_s6  ;;  %s2289_s21 = smov %s1717_s22 }
 0x3da   : > { %s2290_s22 = smov %s2292_s26  ;;  %17 = sbr.rel (!%p15_p5) target bundleno = 4 (0x4), region = 92 }
 0x3e1   :  { %1160 = vsyncpa [#allocation4], 1 }
 0x3e2   :  { %1162 = vsyncpa [#allocation4 + $0x1], 1 }

</bundles_post_ra>
